<compile_context>
chip_gen: v5e
topology: v5e:2x2
jax: 0.10.0
libtpu: 0.0.40
codegen_flags: <defaults>
</compile_context>

<pallas_src>
import functools

import jax
import jax.numpy as jnp
from jax.experimental import pallas as pl
from jax.experimental.pallas import tpu as pltpu

BN_EPS = 1e-5


def _make_kernel(mxu_dtype):
    def kernel(x_ref, w_ref, p_ref, o_ref, acc_ref):
        # x_ref:   (B, TK)   batch x input-feature tile
        # w_ref:   (TK, TN)  weight tile (stored transposed: [in, out])
        # p_ref:   (2, TN)   row 0 = gamma, row 1 = beta
        # o_ref:   (B, TN)   output tile
        # acc_ref: (B, TN)   f32 matmul accumulator (persistent across K steps)
        k = pl.program_id(1)

        @pl.when(k == 0)
        def _():
            acc_ref[...] = jnp.zeros_like(acc_ref)

        a = x_ref[...]
        w = w_ref[...]
        if mxu_dtype is not None:
            a = a.astype(mxu_dtype)
            w = w.astype(mxu_dtype)
        acc_ref[...] += jnp.dot(a, w, preferred_element_type=jnp.float32)

        @pl.when(k == pl.num_programs(1) - 1)
        def _():
            y = acc_ref[...]                      # (B, TN) f32
            inv_b = 1.0 / y.shape[0]
            # Single-pass batch statistics (per output feature).
            s1 = jnp.sum(y, axis=0, keepdims=True)          # (1, TN)
            s2 = jnp.sum(y * y, axis=0, keepdims=True)      # (1, TN)
            mean = s1 * inv_b
            var = s2 * inv_b - mean * mean                  # biased variance
            gamma = p_ref[0:1, :]
            beta = p_ref[1:2, :]
            scale = gamma * jax.lax.rsqrt(var + BN_EPS)     # (1, TN)
            shift = beta - mean * scale                     # (1, TN)
            # Note: the Linear bias is omitted on purpose -- under training-mode
            # BN the mean subtraction cancels it exactly.
            o_ref[...] = jnp.maximum(y * scale + shift, 0.0).astype(o_ref.dtype)

    return kernel


def _pick_tile(dim, max_tile, candidates=(512, 384, 256, 128)):
    if dim <= max_tile:
        return dim
    for c in candidates:
        if c <= max_tile and dim % c == 0:
            return c
    return dim  # fallback: single full block


def linear_normed_relu(x, w, gamma, beta, *, tn=None, tk=None, mxu_dtype=None):
    """Fused Linear (no bias needed) + BatchNorm1d(train) + ReLU.

    x:     (B, IN)  f32
    w:     (IN, OUT) f32   (transposed nn.Linear weight)
    gamma: (OUT,)  BN weight
    beta:  (OUT,)  BN bias
    -> (B, OUT) f32
    """
    B, IN = x.shape
    OUT = w.shape[1]

    if tn is None:
        tn = _pick_tile(OUT, 512)       # lane-dense output tiles, few grid steps
    if tk is None:
        tk = _pick_tile(IN, 2048)       # K-tile only when IN is large
    assert OUT % tn == 0 and IN % tk == 0

    params = jnp.stack([gamma, beta], axis=0)   # (2, OUT) slab

    grid = (OUT // tn, IN // tk)                # K axis last ("arbitrary")

    cost = pl.CostEstimate(
        flops=2 * B * IN * OUT + 8 * B * OUT,
        transcendentals=OUT,                                # rsqrt per feature
        bytes_accessed=x.nbytes + w.nbytes + params.nbytes + B * OUT * 4,
    )

    return pl.pallas_call(
        _make_kernel(mxu_dtype),
        out_shape=jax.ShapeDtypeStruct((B, OUT), x.dtype),
        grid_spec=pltpu.PrefetchScalarGridSpec(
            num_scalar_prefetch=0,
            grid=grid,
            in_specs=[
                pl.BlockSpec((B, tk), lambda j, k: (0, k)),    # x: batch x K tile
                pl.BlockSpec((tk, tn), lambda j, k: (k, j)),   # weight tile
                pl.BlockSpec((2, tn), lambda j, k: (0, j)),    # gamma/beta slab
            ],
            out_specs=pl.BlockSpec((B, tn), lambda j, k: (0, j)),
            scratch_shapes=[pltpu.VMEM((B, tn), jnp.float32)],
        ),
        compiler_params=pltpu.CompilerParams(
            dimension_semantics=("parallel", "arbitrary"),
        ),
        cost_estimate=cost,
    )(x, w, params)


def reference(x, w, b, gamma, beta):
    """Pure-JAX reference matching PyTorch Linear + BatchNorm1d(train) + ReLU."""
    y = x @ w + b[None, :]
    mean = jnp.mean(y, axis=0, keepdims=True)
    var = jnp.mean((y - mean) ** 2, axis=0, keepdims=True)
    y = (y - mean) / jnp.sqrt(var + BN_EPS) * gamma[None, :] + beta[None, :]
    return jnp.maximum(y, 0.0)


if __name__ == "__main__":
    # Small shapes implied by the module: Linear(in_neurons, out_neurons) on 2-D input.
    B, IN, OUT = 8, 32, 256

    key = jax.random.PRNGKey(0)
    kx, kw, kb, kg, kbe = jax.random.split(key, 5)

    x = jax.random.normal(kx, (B, IN), dtype=jnp.float32)
    bound = 1.0 / jnp.sqrt(IN)
    w = jax.random.uniform(kw, (IN, OUT), minval=-bound, maxval=bound, dtype=jnp.float32)
    # Linear bias exists in the module but is cancelled by training-mode BN;
    # the reference includes it to demonstrate the cancellation is exact.
    b = jax.random.uniform(kb, (OUT,), minval=-bound, maxval=bound, dtype=jnp.float32)
    gamma = 1.0 + 0.1 * jax.random.normal(kg, (OUT,), dtype=jnp.float32)
    beta = 0.1 * jax.random.normal(kbe, (OUT,), dtype=jnp.float32)

    out = linear_normed_relu(x, w, gamma, beta)
    out = jax.block_until_ready(out)

    ref = reference(x, w, b, gamma, beta)
    assert out.shape == (B, OUT) and out.dtype == jnp.float32
    assert jnp.allclose(out, ref, atol=1e-4, rtol=1e-4), float(jnp.max(jnp.abs(out - ref)))

    # TODO(synk): BatchNorm1d running_mean/running_var EMA buffer updates are a
    # training-side effect and are not modeled (they do not affect this output).
    print("KERNEL_OK")
</pallas_src>

<mosaic_0001>
module attributes {stable_mosaic.version = 11 : i64} {
  func.func @kernel(%arg0: i32, %arg1: i32, %arg2: memref<8x32xf32, #tpu.memory_space<vmem>>, %arg3: memref<32x256xf32, #tpu.memory_space<vmem>>, %arg4: memref<2x256xf32, #tpu.memory_space<vmem>>, %arg5: memref<8x256xf32, #tpu.memory_space<vmem>>, %arg6: memref<8x256xf32, #tpu.memory_space<vmem>>) attributes {dimension_semantics = [#tpu.dimension_semantics<parallel>, #tpu.dimension_semantics<arbitrary>], iteration_bounds = array<i64: 1, 1>, scalar_prefetch = 0 : i64, scratch_operands = 1 : i64, tpu.core_type = #tpu.core_type<tc>, window_params = [{transform_indices = @transform_0, window_bounds = array<i64: 8, 32>}, {transform_indices = @transform_1, window_bounds = array<i64: 32, 256>}, {transform_indices = @transform_2, window_bounds = array<i64: 2, 256>}, {transform_indices = @transform_3, window_bounds = array<i64: 8, 256>}]} {
    %c0_i32 = arith.constant 0 : i32
    %0 = arith.cmpi eq, %arg1, %c0_i32 : i32
    %1 = arith.extui %0 : i1 to i32
    %c0_i32_0 = arith.constant 0 : i32
    %2 = arith.cmpi ne, %1, %c0_i32_0 : i32
    scf.if %2 {
      %cst_10 = arith.constant 0.000000e+00 : f32
      %12 = vector.broadcast %cst_10 : f32 to vector<8x256xf32>
      %c0_11 = arith.constant 0 : index
      %c0_12 = arith.constant 0 : index
      %13 = vector.load %arg6[%c0_11, %c0_12] : memref<8x256xf32, #tpu.memory_space<vmem>>, vector<8x256xf32>
      tpu.vector_store %arg6[%c0_11, %c0_12], %12 {strides = array<i32>} : memref<8x256xf32, #tpu.memory_space<vmem>>, vector<8x256xf32>,
    } else {
    }
    %c0 = arith.constant 0 : index
    %c0_1 = arith.constant 0 : index
    %3 = vector.load %arg2[%c0, %c0_1] : memref<8x32xf32, #tpu.memory_space<vmem>>, vector<8x32xf32>
    %c0_2 = arith.constant 0 : index
    %c0_3 = arith.constant 0 : index
    %4 = vector.load %arg3[%c0_2, %c0_3] : memref<32x256xf32, #tpu.memory_space<vmem>>, vector<32x256xf32>
    %c0_4 = arith.constant 0 : index
    %c0_5 = arith.constant 0 : index
    %5 = vector.load %arg6[%c0_4, %c0_5] : memref<8x256xf32, #tpu.memory_space<vmem>>, vector<8x256xf32>
    %cst = arith.constant dense<0.000000e+00> : vector<8x256xf32>
    %6 = tpu.matmul %3, %4, %cst {dimension_numbers = #tpu.dot_dimension_numbers<[1], [0], [0], [1], [0, 0, 1, 1], [], []>} : vector<8x32xf32>, vector<32x256xf32>, vector<8x256xf32> -> vector<8x256xf32>
    %7 = arith.addf %5, %6 : vector<8x256xf32>
    %c0_6 = arith.constant 0 : index
    %c0_7 = arith.constant 0 : index
    %8 = vector.load %arg6[%c0_6, %c0_7] : memref<8x256xf32, #tpu.memory_space<vmem>>, vector<8x256xf32>
    tpu.vector_store %arg6[%c0_6, %c0_7], %7 {strides = array<i32>} : memref<8x256xf32, #tpu.memory_space<vmem>>, vector<8x256xf32>,
    %c0_i32_8 = arith.constant 0 : i32
    %9 = arith.cmpi eq, %arg1, %c0_i32_8 : i32
    %10 = arith.extui %9 : i1 to i32
    %c0_i32_9 = arith.constant 0 : i32
    %11 = arith.cmpi ne, %10, %c0_i32_9 : i32
    scf.if %11 {
      %c0_10 = arith.constant 0 : index
      %c0_11 = arith.constant 0 : index
      %12 = vector.load %arg6[%c0_10, %c0_11] : memref<8x256xf32, #tpu.memory_space<vmem>>, vector<8x256xf32>
      %cst_12 = arith.constant dense<0.000000e+00> : vector<256xf32>
      %13 = vector.multi_reduction <add>, %12, %cst_12 [0] : vector<8x256xf32> to vector<256xf32>
      %14 = vector.shape_cast %13 : vector<256xf32> to vector<1x256xf32>
      %15 = arith.mulf %12, %12 : vector<8x256xf32>
      %cst_13 = arith.constant dense<0.000000e+00> : vector<256xf32>
      %16 = vector.multi_reduction <add>, %15, %cst_13 [0] : vector<8x256xf32> to vector<256xf32>
      %17 = vector.shape_cast %16 : vector<256xf32> to vector<1x256xf32>
      %cst_14 = arith.constant 1.250000e-01 : f32
      %18 = vector.broadcast %cst_14 : f32 to vector<1x256xf32>
      %19 = arith.mulf %14, %18 : vector<1x256xf32>
      %cst_15 = arith.constant 1.250000e-01 : f32
      %20 = vector.broadcast %cst_15 : f32 to vector<1x256xf32>
      %21 = arith.mulf %17, %20 : vector<1x256xf32>
      %22 = arith.mulf %19, %19 : vector<1x256xf32>
      %23 = arith.subf %21, %22 : vector<1x256xf32>
      %c0_16 = arith.constant 0 : index
      %c0_17 = arith.constant 0 : index
      %24 = vector.load %arg4[%c0_16, %c0_17] : memref<2x256xf32, #tpu.memory_space<vmem>>, vector<1x256xf32>
      %c1 = arith.constant 1 : index
      %c0_18 = arith.constant 0 : index
      %25 = vector.load %arg4[%c1, %c0_18] : memref<2x256xf32, #tpu.memory_space<vmem>>, vector<1x256xf32>
      %cst_19 = arith.constant 9.99999974E-6 : f32
      %26 = vector.broadcast %cst_19 : f32 to vector<1x256xf32>
      %27 = arith.addf %23, %26 : vector<1x256xf32>
      %28 = math.rsqrt %27 : vector<1x256xf32>
      %29 = arith.mulf %24, %28 : vector<1x256xf32>
      %30 = arith.mulf %19, %29 : vector<1x256xf32>
      %31 = arith.subf %25, %30 : vector<1x256xf32>
      %32 = vector.broadcast %29 : vector<1x256xf32> to vector<8x256xf32>
      %33 = arith.mulf %12, %32 : vector<8x256xf32>
      %34 = vector.broadcast %31 : vector<1x256xf32> to vector<8x256xf32>
      %35 = arith.addf %33, %34 : vector<8x256xf32>
      %cst_20 = arith.constant 0.000000e+00 : f32
      %36 = vector.broadcast %cst_20 : f32 to vector<8x256xf32>
      %37 = arith.maximumf %35, %36 : vector<8x256xf32>
      %c0_21 = arith.constant 0 : index
      %c0_22 = arith.constant 0 : index
      %38 = vector.load %arg5[%c0_21, %c0_22] : memref<8x256xf32, #tpu.memory_space<vmem>>, vector<8x256xf32>
      tpu.vector_store %arg5[%c0_21, %c0_22], %37 {strides = array<i32>} : memref<8x256xf32, #tpu.memory_space<vmem>>, vector<8x256xf32>,
    } else {
    }
    return
  }
  func.func @transform_0(%arg0: i32, %arg1: i32) -> (i32, i32) {
    %c0_i32 = arith.constant 0 : i32
    %c0_i32_0 = arith.constant 0 : i32
    return %c0_i32, %arg1 : i32, i32
  }
  func.func @transform_1(%arg0: i32, %arg1: i32) -> (i32, i32) {
    %c0_i32 = arith.constant 0 : i32
    return %arg1, %arg0 : i32, i32
  }
  func.func @transform_2(%arg0: i32, %arg1: i32) -> (i32, i32) {
    %c0_i32 = arith.constant 0 : i32
    %c0_i32_0 = arith.constant 0 : i32
    return %c0_i32, %arg0 : i32, i32
  }
  func.func @transform_3(%arg0: i32, %arg1: i32) -> (i32, i32) {
    %c0_i32 = arith.constant 0 : i32
    %c0_i32_0 = arith.constant 0 : i32
    return %c0_i32, %arg0 : i32, i32
  }
}

</mosaic_0001>

<bundles_post_ra>
// kernel: tpu_custom_call.1
= control target key start
LH: loop header
LB: loop body
LE: loop exit
PB: predicated region body
PF: predicated region fallthrough
CT: control target
= control target key end

     0   :  { %8 = vsyncpa [#allocation4], 0  ;;  %s404_s0 = inlined_call_operand.hbm [shape: f32[8,32], index: 0, kind: input, shape index: {}]   ;;  %s405_s1 = inlined_call_operand.hbm [shape: f32[32,256], index: 1, kind: input, shape index: {}]   ;;  %s406_s2 = inlined_call_operand.hbm [shape: f32[2,256], index: 2, kind: input, shape index: {}]   ;;  %s407_s3 = inlined_call_operand.hbm [shape: f32[8,256], index: 3, kind: output, shape index: {}]  }
   0x1   :  { %9 = vsyncpa [#allocation7], 0  ;;  %s26_s14 = sshll.u32 %s405_s1, 4  ;;  %s27_s14 = int_to_ptr.hbm [resolvable:$true] %s26_s14 }
   0x2   :  { %10 = vsyncpa [#allocation5], 0  ;;  %s352_s15 = smov [#allocation6]   ;;  %s16_s19 = sshll.u32 %s404_s0, 4  ;;  %s17_s19 = int_to_ptr.hbm [resolvable:$true] %s16_s19 }
   0x3   :  { %s28_s16 = sshll.u32 %s352_s15, 4  ;;  %s353_s20 = smov 256   ;;  %s29_s16 = int_to_ptr.vmem [resolvable:$true] %s28_s16 }
   0x4   :  { %s354_s21 = smov 16   ;;  %s355_s22 = smov [#allocation3]  }
   0x5   :  { %34 = dma.hbm_to_vmem [thread:$0]  %s27_s14, 1024, %s29_s16, [#allocation7], %s353_s20, %s353_s20, %s354_s21  }
   0x6   :  { %s18_s23 = sshll.u32 %s355_s22, 4  ;;  %s40_s26 = sshll.u32 %s406_s2, 4  ;;  %s19_s23 = int_to_ptr.vmem [resolvable:$true] %s18_s23  ;;  %s41_s26 = int_to_ptr.hbm [resolvable:$true] %s40_s26 }
   0x7   :  { %21 = dma.hbm_to_vmem [thread:$0]  %s17_s19, 128, %s19_s23, [#allocation4]  }
   0x8   :  { %s356_s1 = smov [#allocation8]  }
   0x9   :  { %s42_s27 = sshll.u32 %s356_s1, 4  ;;  %s43_s27 = int_to_ptr.vmem [resolvable:$true] %s42_s27 }
   0xa   :  { %45 = dma.hbm_to_vmem [thread:$0]  %s41_s26, 64, %s43_s27, [#allocation7]  }
   0xb   :  { %346 = dma.done.wait [#allocation4], 128  }
   0xc   :  { %347 = vsyncadd [#allocation4], 4294967168 }
   0xd   :  { %348 = dma.done.wait [#allocation7], 1088  }
   0xe   :  { %349 = vsyncadd [#allocation7], 4294966208  ;;  %v71_v0 = vld [vmem:[#allocation6 + $0x30] sm:$0xff]  ;;  %v72_v1 = vld [vmem:[#allocation6 + $0x38] sm:$0xff]  ;;  %vm75_vm0 = vcmask 261120   ;;  %vm190_vm6 = vcmask 1040384  }
   0xf   :  { %v69_v2 = vld [vmem:[#allocation6 + $0x20] sm:$0xff]  ;;  %91 = vmatpush.msra.mxu0 %v71_v0  ;;  %111 = vmatpush.msra.mxu1 %v72_v1  ;;  %v70_v3 = vld [vmem:[#allocation6 + $0x28] sm:$0xff]  ;;  %v67_v4 = vld [vmem:[#allocation6 + $0x10] sm:$0xff]  ;;  %s357_s0 = smov [#allocation9]   ;;  %s227_s30 = sshll.u32 %s407_s3, 4  ;;  %s228_s30 = int_to_ptr.hbm [resolvable:$true] %s227_s30 }
  0x10   :  { %v68_v5 = vld [vmem:[#allocation6 + $0x18] sm:$0xff]  ;;  %v65_v6 = vld [vmem:[#allocation6] sm:$0xff]  ;;  %v66_v7 = vld [vmem:[#allocation6 + $0x8] sm:$0xff]  ;;  %s225_s2 = sshll.u32 %s357_s0, 4  ;;  %s226_s2 = int_to_ptr.vmem [resolvable:$true] %s225_s2 }
  0x11   :  { %92 = vmatpush.msra.mxu0 %v69_v2  ;;  %112 = vmatpush.msra.mxu1 %v70_v3  ;;  %v64_v8 = vld [vmem:[#allocation3] sm:$0xff]  ;;  %v162_v60 = vld [vmem:[#allocation8] ss:$2 sm:$0x3] }
  0x13   :  { %93 = vmatpush.msra.mxu0 %v67_v4  ;;  %113 = vmatpush.msra.mxu1 %v68_v5  ;;  %v164_v4 = vld [vmem:[#allocation8 + $0x1] ss:$2 sm:$0x3] }
  0x15   :  { %94 = vmatpush.msra.mxu0 %v65_v6  ;;  %114 = vmatpush.msra.mxu1 %v66_v7 }
  0x16   :  { %238 = vmatmul.msk.f32.vlgmr.msra.gmra.mxu0 %vm75_vm0, %v64_v8  ;;  %239 = vmatmul.msk.f32.vlgmr.msra.gmra.mxu1 %vm75_vm0, %v64_v8 }
  0x93   :  { %v387_v9 = vpop.f32.mrf.mxu0  ;;  %v389_v10 = vpop.f32.mrf.mxu1 }
  0x94   :  { %v128_v11 = vrot.slane %v387_v9, 4  ;;  %v140_v12 = vmul.f32 %v387_v9, %v387_v9  ;;  %v134_v13 = vrot.slane %v389_v10, 4  ;;  %v141_v14 = vmul.f32 %v389_v10, %v389_v10 }
  0x96   :  { %v129_v15 = vadd.f32 %v128_v11, %v387_v9  ;;  %v142_v16 = vrot.slane %v140_v12, 4  ;;  %v135_v17 = vadd.f32 %v134_v13, %v389_v10  ;;  %v148_v18 = vrot.slane %v141_v14, 4 }
  0x98   :  { %v130_v19 = vrot.slane %v129_v15, 2  ;;  %v143_v20 = vadd.f32 %v142_v16, %v140_v12  ;;  %v136_v21 = vrot.slane %v135_v17, 2  ;;  %v149_v22 = vadd.f32 %v148_v18, %v141_v14 }
  0x9a   :  { %v131_v23 = vadd.f32 %v130_v19, %v129_v15  ;;  %v144_v24 = vrot.slane %v143_v20, 2  ;;  %v137_v25 = vadd.f32 %v136_v21, %v135_v17  ;;  %v150_v26 = vrot.slane %v149_v22, 2 }
  0x9c   :  { %v132_v27 = vrot.slane %v131_v23, 1  ;;  %v145_v28 = vadd.f32 %v144_v24, %v143_v20  ;;  %v138_v29 = vrot.slane %v137_v25, 1  ;;  %v151_v30 = vadd.f32 %v150_v26, %v149_v22 }
  0x9e   :  { %v133_v31 = vadd.f32 %v132_v27, %v131_v23  ;;  %v146_v32 = vrot.slane %v145_v28, 1  ;;  %v139_v33 = vadd.f32 %v138_v29, %v137_v25  ;;  %v152_v34 = vrot.slane %v151_v30, 1 }
  0xa0   :  { %v147_v35 = vadd.f32 %v146_v32, %v145_v28  ;;  %v154_v36 = vmul.f32 0.125, %v133_v31  ;;  %v153_v37 = vadd.f32 %v152_v34, %v151_v30  ;;  %v155_v38 = vmul.f32 0.125, %v139_v33 }
  0xa2   :  { %v156_v39 = vmul.f32 0.125, %v147_v35  ;;  %v158_v40 = vmul.f32 %v154_v36, %v154_v36  ;;  %v157_v41 = vmul.f32 0.125, %v153_v37  ;;  %v159_v42 = vmul.f32 %v155_v38, %v155_v38 }
  0xa4   :  { %v160_v43 = vsub.f32 %v156_v39, %v158_v40  ;;  %v161_v44 = vsub.f32 %v157_v41, %v159_v42 }
  0xa6   :  { %v165_v45 = vadd.f32 1e-05, %v160_v43  ;;  %v166_v46 = vadd.f32 1e-05, %v161_v44 }
  0xa8   :  { %246 = vrsqrt.f32 %v165_v45  ;;  %vm183_vm3 = vweird.f32 %v166_v46  ;;  %vm173_vm5 = vweird.f32 %v165_v45 }
  0xa9   :  { %248 = vrsqrt.f32 %v166_v46 }
  0xae   :  { %v247_v47 = vpop.eup %246 }
  0xaf   :  { %v249_v48 = vpop.eup %248  ;;  %v168_v49 = vmul.f32 %v247_v47, %v165_v45  ;;  %vm174_vm2 = vweird.f32 %v247_v47 }
  0xb0   :  { %v178_v50 = vmul.f32 %v249_v48, %v166_v46  ;;  %vm184_vm1 = vweird.f32 %v249_v48  ;;  %vm175_vm7 = vmor %vm173_vm5, %vm174_vm2 }
  0xb1   :  { %v169_v51 = vmul.f32 %v247_v47, %v168_v49  ;;  %vm185_vm4 = vmor %vm183_vm3, %vm184_vm1 }
  0xb2   :  { %v179_v52 = vmul.f32 %v249_v48, %v178_v50 }
  0xb3   :  { %v170_v53 = vmul.f32 0.5, %v169_v51 }
  0xb4   :  { %v180_v54 = vmul.f32 0.5, %v179_v52 }
  0xb5   :  { %v171_v55 = vsub.f32 1.5, %v170_v53 }
  0xb6   :  { %v181_v56 = vsub.f32 1.5, %v180_v54 }
  0xb7   :  { %v172_v57 = vmul.f32 %v247_v47, %v171_v55 }
  0xb8   :  { %v182_v58 = vmul.f32 %v249_v48, %v181_v56 }
  0xb9   :  { %v176_v62 = vsel %vm175_vm7, %v247_v47, %v172_v57 }
  0xba   :  { %v186_v59 = vsel %vm185_vm4, %v249_v48, %v182_v58 }
  0xbb   :  { %v189_v61 = vrot.slane %v186_v59, 7 }
  0xbd   :  { %v191_v63 = vsel %vm190_vm6, %v176_v62, %v189_v61 }
  0xbe   :  { %v193_v0 = vmul.f32 %v191_v63, %v162_v60 }
  0xc0   :  { %v195_v1 = vperm.slane %v193_v0, 0  ;;  %v196_v2 = vperm.slane %v193_v0, 1 }
  0xc2   :  { %v200_v3 = vmul.f32 %v196_v2, %v155_v38  ;;  %v199_v5 = vmul.f32 %v195_v1, %v154_v36  ;;  %v208_v11 = vmul.f32 %v196_v2, %v389_v10  ;;  %v207_v13 = vmul.f32 %v195_v1, %v387_v9 }
  0xc4   :  { %v203_v6 = vrot.slane %v200_v3, 7 }
  0xc6   :  { %v204_v7 = vsel %vm190_vm6, %v199_v5, %v203_v6 }
  0xc7   :  { %v206_v8 = vsub.f32 %v164_v4, %v204_v7 }
  0xc9   :  { %v211_v12 = vperm.slane %v206_v8, 1  ;;  %v210_v14 = vperm.slane %v206_v8, 0 }
  0xcb   :  { %v215_v15 = vadd.f32 %v211_v12, %v208_v11  ;;  %v214_v16 = vadd.f32 %v210_v14, %v207_v13 }
  0xcd   :  { %v217_v17 = vmax.f32 %v215_v15, 0.0  ;;  %v216_v18 = vmax.f32 %v214_v16, 0.0 }
  0xcf   :  { %219 = vst [vmem:[#allocation9 + $0x8] sm:$0xff] %v217_v17 }
  0xd0   :  { %218 = vst [vmem:[#allocation9] sm:$0xff] %v216_v18 }
  0xd1   :  { %230 = dma.vmem_to_hbm [thread:$0]  %s226_s2, 256, %s228_s30, [#allocation5]  }
  0xd2   :  { %350 = dma.done.wait [#allocation5], 256  }
  0xd3   :  { %351 = vsyncadd [#allocation5], 4294967040 }
  0xd4   :  { %235 = vsyncpa [#allocation4], 1 }
  0xd5   :  { %236 = vsyncpa [#allocation7], 1 }
  0xd6   :  { %237 = vsyncpa [#allocation5], 1 }

</bundles_post_ra>
